<compile_context>
chip_gen: v5e
topology: v5e:2x2
jax: 0.10.0
libtpu: 0.0.40
codegen_flags: <defaults>
</compile_context>

<pallas_src>
import jax
import jax.numpy as jnp
from jax.experimental import pallas as pl
from jax.experimental.pallas import tpu as pltpu

_LANES = 128  # pad logit dim to a full lane register for dense stores


def _fused_head_kernel(
    g1_ref, r1_ref, g2_ref, r2_ref,          # encoder outputs [TB, D] / [TB, H]
    a_g1_ref, a_r1_ref, a_g2_ref, a_r2_ref,  # folded projections [D|H, C_pad]
    b_ref,                                   # folded bias (f32)  [1, C_pad]
    out_ref,                                 # logits             [TB, C_pad]
):
    f32 = jnp.float32
    acc = jnp.dot(g1_ref[...], a_g1_ref[...], preferred_element_type=f32)
    acc += jnp.dot(r1_ref[...], a_r1_ref[...], preferred_element_type=f32)
    acc += jnp.dot(g2_ref[...], a_g2_ref[...], preferred_element_type=f32)
    acc += jnp.dot(r2_ref[...], a_r2_ref[...], preferred_element_type=f32)
    out_ref[...] = (acc + b_ref[...]).astype(out_ref.dtype)


def fold_params(wfc, bfc, w1, b1, w2, b2, *, decoder_input_size,
                param_dtype=jnp.bfloat16):
    """Fold fc -> fc1 -> fc2 (all affine, PyTorch [out,in] layout) once.

    Folding is done in f32; the projection matrices are stored in
    `param_dtype` (bf16 by default) and zero-padded to 128 output lanes.
    Returns (A_g1, A_r1, A_g2, A_r2, b_eff, num_classes).
    """
    D = decoder_input_size
    C, S = w2.shape
    assert wfc.shape[0] == S and w1.shape == (S, 2 * S)
    assert C <= _LANES

    f32 = jnp.float32
    wfc_g = wfc[:, :D].T.astype(f32)   # [D, S]  cat(gnn, rob): gnn half
    wfc_r = wfc[:, D:].T.astype(f32)   # [H, S]  cat(gnn, rob): rob half
    w1a = w1[:, :S].T.astype(f32)      # [S, S]  cat(h1, h2):   h1 half
    w1b = w1[:, S:].T.astype(f32)      # [S, S]  cat(h1, h2):   h2 half
    w2t = w2.T.astype(f32)             # [S, C]

    m1 = w1a @ w2t                     # fc1(h1-half) -> fc2   [S, C]
    m2 = w1b @ w2t                     # fc1(h2-half) -> fc2   [S, C]

    a_g1 = wfc_g @ m1                  # [D, C]
    a_r1 = wfc_r @ m1                  # [H, C]
    a_g2 = wfc_g @ m2                  # [D, C]
    a_r2 = wfc_r @ m2                  # [H, C]
    b_eff = bfc.astype(f32) @ (m1 + m2) + b1.astype(f32) @ w2t + b2.astype(f32)

    def pad_w(a):
        return jnp.pad(a, ((0, 0), (0, _LANES - C))).astype(param_dtype)

    b_pad = jnp.pad(b_eff.reshape(1, C), ((0, 0), (0, _LANES - C))).astype(f32)
    return pad_w(a_g1), pad_w(a_r1), pad_w(a_g2), pad_w(a_r2), b_pad, C


def _pick_batch_tile(B, block_b):
    """Batch tile: >=2 grid steps when possible (keeps both v7x TCs busy),
    multiple of 8 sublanes, capped at block_b."""
    if B <= 8:
        return B                        # block == full array dim (legal, 1 step)
    half = (B + 1) // 2                 # cdiv(B, 2)
    half = ((half + 7) // 8) * 8        # round up to sublane multiple
    return min(block_b, half)


def model_forward(gnn_out1, rob_out1, gnn_out2, rob_out2, folded, *,
                  block_b=1024):
    """Fused forward of Model's head on pre-folded params."""
    a_g1, a_r1, a_g2, a_r2, b_eff, num_classes = folded
    cdt = a_g1.dtype                    # compute dtype (bf16 or f32)
    B, D = gnn_out1.shape
    H = rob_out1.shape[1]
    Cp = a_g1.shape[1]

    # Cast activations at the boundary so the kernel streams the narrow dtype
    # (in production the encoders already emit bf16 / the cast fuses upstream).
    g1 = gnn_out1.astype(cdt)
    r1 = rob_out1.astype(cdt)
    g2 = gnn_out2.astype(cdt)
    r2 = rob_out2.astype(cdt)
    out_dtype = cdt                     # lane-padded logits in compute dtype

    TB = _pick_batch_tile(B, block_b)
    grid = (pl.cdiv(B, TB),)

    act_isz = jnp.dtype(cdt).itemsize
    out_isz = jnp.dtype(out_dtype).itemsize

    # Advisory cost: 4 dots of (B x D|H) @ (D|H x Cp), mem-bound bytes.
    cost = pl.CostEstimate(
        flops=4 * B * (D + H) * Cp,
        transcendentals=0,
        bytes_accessed=(2 * B * (D + H) * act_isz      # activations
                        + 2 * (D + H) * Cp * act_isz   # folded weights
                        + Cp * 4                        # bias (f32)
                        + B * Cp * out_isz),            # padded logits
    )

    def vmem_limit(w_bufs):
        footprint = (2 * 2 * TB * (D + H) * act_isz            # 4 act tiles x2 buf
                     + w_bufs * (2 * (D + H) * Cp * act_isz + Cp * 4)
                     + 2 * TB * Cp * out_isz)                   # out x2 buf
        # headroom for Mosaic internal scratch; cap for v7x's 64 MiB/TC.
        return min(max(int(footprint * 1.5) + (2 << 20), 16 << 20), 48 << 20)

    def act_spec(feat):
        return pl.BlockSpec((TB, feat), lambda i: (i, 0))

    def build_call(single_buffer_consts):
        if single_buffer_consts:
            const_kw = dict(pipeline_mode=pl.Buffered(1))  # constant index_map:
            w_bufs = 1                                     # don't double-buffer
        else:
            const_kw = {}
            w_bufs = 2

        def w_spec(feat):
            return pl.BlockSpec((feat, Cp), lambda i: (0, 0), **const_kw)

        return pl.pallas_call(
            _fused_head_kernel,
            out_shape=jax.ShapeDtypeStruct((B, Cp), out_dtype),
            grid=grid,
            in_specs=[
                act_spec(D), act_spec(H), act_spec(D), act_spec(H),
                w_spec(D), w_spec(H), w_spec(D), w_spec(H),
                pl.BlockSpec((1, Cp), lambda i: (0, 0), **const_kw),
            ],
            out_specs=pl.BlockSpec((TB, Cp), lambda i: (i, 0)),
            compiler_params=pltpu.CompilerParams(
                dimension_semantics=("parallel",),   # shard batch over v7x's 2 TCs
                vmem_limit_bytes=vmem_limit(w_bufs),
            ),
            cost_estimate=cost,
        )

    args = (g1, r1, g2, r2, a_g1, a_r1, a_g2, a_r2, b_eff)
    try:
        out_padded = build_call(True)(*args)
    except Exception:
        # Fallback if single-buffered pipeline_mode is unsupported in this build.
        out_padded = build_call(False)(*args)

    # Drop the lane padding; upcast the (tiny) real logits to f32 for the loss.
    return out_padded[:, :num_classes].astype(jnp.float32)


if __name__ == "__main__":
    # Small, forward-consistent shapes (production: H=768, real S / D / B).
    B = 2       # batch
    D = 32      # decoder_input_size  (gnn_encoder output)
    H = 32      # roberta hidden_size (pooler_output)
    S = 32      # siamese_input_size
    C = 2       # output classes

    key = jax.random.PRNGKey(0)
    ks = jax.random.split(key, 10)

    # Synthetic encoder outputs (stand-ins for GNNEncoder / RoBERTa pooler).
    gnn_out1 = jax.random.normal(ks[0], (B, D), jnp.float32)
    rob_out1 = jax.random.normal(ks[1], (B, H), jnp.float32)
    gnn_out2 = jax.random.normal(ks[2], (B, D), jnp.float32)
    rob_out2 = jax.random.normal(ks[3], (B, H), jnp.float32)

    # Parameters in PyTorch Linear layout ([out_features, in_features]).
    wfc = jax.random.normal(ks[4], (S, D + H), jnp.float32) * 0.05
    bfc = jax.random.normal(ks[5], (S,), jnp.float32) * 0.05
    w1 = jax.random.normal(ks[6], (S, 2 * S), jnp.float32) * 0.05
    b1 = jax.random.normal(ks[7], (S,), jnp.float32) * 0.05
    w2 = jax.random.normal(ks[8], (C, S), jnp.float32) * 0.05
    b2 = jax.random.normal(ks[9], (C,), jnp.float32) * 0.05

    # Layer-by-layer pure-JAX reference (exactly the PyTorch forward).
    h1 = jnp.concatenate([gnn_out1, rob_out1], axis=1) @ wfc.T + bfc
    h2 = jnp.concatenate([gnn_out2, rob_out2], axis=1) @ wfc.T + bfc
    ref = (jnp.concatenate([h1, h2], axis=1) @ w1.T + b1) @ w2.T + b2

    # f32 path: exact-math check.
    folded_f32 = fold_params(wfc, bfc, w1, b1, w2, b2, decoder_input_size=D,
                             param_dtype=jnp.float32)
    out_f32 = jax.block_until_ready(
        model_forward(gnn_out1, rob_out1, gnn_out2, rob_out2, folded_f32))

    # bf16 path: production / bandwidth-optimized configuration.
    folded_bf16 = fold_params(wfc, bfc, w1, b1, w2, b2, decoder_input_size=D,
                              param_dtype=jnp.bfloat16)
    out_bf16 = jax.block_until_ready(
        model_forward(gnn_out1, rob_out1, gnn_out2, rob_out2, folded_bf16))

    assert out_f32.shape == (B, C), out_f32.shape
    assert out_bf16.shape == (B, C), out_bf16.shape
    assert jnp.allclose(out_f32, ref, atol=1e-4, rtol=1e-4), (out_f32, ref)
    assert jnp.allclose(out_bf16, ref, atol=3e-2, rtol=3e-2), (out_bf16, ref)
    print("KERNEL_OK")
</pallas_src>

<mosaic_0001>
module attributes {stable_mosaic.version = 11 : i64} {
  func.func @_fused_head_kernel(%arg0: i32, %arg1: memref<2x32xf32, #tpu.memory_space<vmem>>, %arg2: memref<2x32xf32, #tpu.memory_space<vmem>>, %arg3: memref<2x32xf32, #tpu.memory_space<vmem>>, %arg4: memref<2x32xf32, #tpu.memory_space<vmem>>, %arg5: memref<32x128xf32, #tpu.memory_space<vmem>>, %arg6: memref<32x128xf32, #tpu.memory_space<vmem>>, %arg7: memref<32x128xf32, #tpu.memory_space<vmem>>, %arg8: memref<32x128xf32, #tpu.memory_space<vmem>>, %arg9: memref<1x128xf32, #tpu.memory_space<vmem>>, %arg10: memref<2x128xf32, #tpu.memory_space<vmem>>) attributes {dimension_semantics = [#tpu.dimension_semantics<parallel>], iteration_bounds = array<i64: 1>, scalar_prefetch = 0 : i64, scratch_operands = 0 : i64, tpu.core_type = #tpu.core_type<tc>, window_params = [{transform_indices = @transform_0, window_bounds = array<i64: 2, 32>}, {transform_indices = @transform_1, window_bounds = array<i64: 2, 32>}, {transform_indices = @transform_2, window_bounds = array<i64: 2, 32>}, {transform_indices = @transform_3, window_bounds = array<i64: 2, 32>}, {pipeline_mode = #tpu.pipeline_mode<synchronous>, transform_indices = @transform_4, window_bounds = array<i64: 32, 128>}, {pipeline_mode = #tpu.pipeline_mode<synchronous>, transform_indices = @transform_5, window_bounds = array<i64: 32, 128>}, {pipeline_mode = #tpu.pipeline_mode<synchronous>, transform_indices = @transform_6, window_bounds = array<i64: 32, 128>}, {pipeline_mode = #tpu.pipeline_mode<synchronous>, transform_indices = @transform_7, window_bounds = array<i64: 32, 128>}, {pipeline_mode = #tpu.pipeline_mode<synchronous>, transform_indices = @transform_8, window_bounds = array<i64: 1, 128>}, {transform_indices = @transform_9, window_bounds = array<i64: 2, 128>}]} {
    %c0 = arith.constant 0 : index
    %c0_0 = arith.constant 0 : index
    %0 = vector.load %arg1[%c0, %c0_0] : memref<2x32xf32, #tpu.memory_space<vmem>>, vector<2x32xf32>
    %c0_1 = arith.constant 0 : index
    %c0_2 = arith.constant 0 : index
    %1 = vector.load %arg5[%c0_1, %c0_2] : memref<32x128xf32, #tpu.memory_space<vmem>>, vector<32x128xf32>
    %cst = arith.constant dense<0.000000e+00> : vector<2x128xf32>
    %2 = tpu.matmul %0, %1, %cst {dimension_numbers = #tpu.dot_dimension_numbers<[1], [0], [0], [1], [0, 0, 1, 1], [], []>} : vector<2x32xf32>, vector<32x128xf32>, vector<2x128xf32> -> vector<2x128xf32>
    %c0_3 = arith.constant 0 : index
    %c0_4 = arith.constant 0 : index
    %3 = vector.load %arg2[%c0_3, %c0_4] : memref<2x32xf32, #tpu.memory_space<vmem>>, vector<2x32xf32>
    %c0_5 = arith.constant 0 : index
    %c0_6 = arith.constant 0 : index
    %4 = vector.load %arg6[%c0_5, %c0_6] : memref<32x128xf32, #tpu.memory_space<vmem>>, vector<32x128xf32>
    %cst_7 = arith.constant dense<0.000000e+00> : vector<2x128xf32>
    %5 = tpu.matmul %3, %4, %cst_7 {dimension_numbers = #tpu.dot_dimension_numbers<[1], [0], [0], [1], [0, 0, 1, 1], [], []>} : vector<2x32xf32>, vector<32x128xf32>, vector<2x128xf32> -> vector<2x128xf32>
    %6 = arith.addf %2, %5 : vector<2x128xf32>
    %c0_8 = arith.constant 0 : index
    %c0_9 = arith.constant 0 : index
    %7 = vector.load %arg3[%c0_8, %c0_9] : memref<2x32xf32, #tpu.memory_space<vmem>>, vector<2x32xf32>
    %c0_10 = arith.constant 0 : index
    %c0_11 = arith.constant 0 : index
    %8 = vector.load %arg7[%c0_10, %c0_11] : memref<32x128xf32, #tpu.memory_space<vmem>>, vector<32x128xf32>
    %cst_12 = arith.constant dense<0.000000e+00> : vector<2x128xf32>
    %9 = tpu.matmul %7, %8, %cst_12 {dimension_numbers = #tpu.dot_dimension_numbers<[1], [0], [0], [1], [0, 0, 1, 1], [], []>} : vector<2x32xf32>, vector<32x128xf32>, vector<2x128xf32> -> vector<2x128xf32>
    %10 = arith.addf %6, %9 : vector<2x128xf32>
    %c0_13 = arith.constant 0 : index
    %c0_14 = arith.constant 0 : index
    %11 = vector.load %arg4[%c0_13, %c0_14] : memref<2x32xf32, #tpu.memory_space<vmem>>, vector<2x32xf32>
    %c0_15 = arith.constant 0 : index
    %c0_16 = arith.constant 0 : index
    %12 = vector.load %arg8[%c0_15, %c0_16] : memref<32x128xf32, #tpu.memory_space<vmem>>, vector<32x128xf32>
    %cst_17 = arith.constant dense<0.000000e+00> : vector<2x128xf32>
    %13 = tpu.matmul %11, %12, %cst_17 {dimension_numbers = #tpu.dot_dimension_numbers<[1], [0], [0], [1], [0, 0, 1, 1], [], []>} : vector<2x32xf32>, vector<32x128xf32>, vector<2x128xf32> -> vector<2x128xf32>
    %14 = arith.addf %10, %13 : vector<2x128xf32>
    %c0_18 = arith.constant 0 : index
    %c0_19 = arith.constant 0 : index
    %15 = vector.load %arg9[%c0_18, %c0_19] : memref<1x128xf32, #tpu.memory_space<vmem>>, vector<1x128xf32>
    %16 = vector.broadcast %15 : vector<1x128xf32> to vector<2x128xf32>
    %17 = arith.addf %14, %16 : vector<2x128xf32>
    %c0_20 = arith.constant 0 : index
    %c0_21 = arith.constant 0 : index
    %18 = vector.load %arg10[%c0_20, %c0_21] : memref<2x128xf32, #tpu.memory_space<vmem>>, vector<2x128xf32>
    tpu.vector_store %arg10[%c0_20, %c0_21], %17 {strides = array<i32>} : memref<2x128xf32, #tpu.memory_space<vmem>>, vector<2x128xf32>,
    return
  }
  func.func @transform_0(%arg0: i32) -> (i32, i32) {
    %c0_i32 = arith.constant 0 : i32
    %c0_i32_0 = arith.constant 0 : i32
    return %arg0, %c0_i32 : i32, i32
  }
  func.func @transform_1(%arg0: i32) -> (i32, i32) {
    %c0_i32 = arith.constant 0 : i32
    %c0_i32_0 = arith.constant 0 : i32
    return %arg0, %c0_i32 : i32, i32
  }
  func.func @transform_2(%arg0: i32) -> (i32, i32) {
    %c0_i32 = arith.constant 0 : i32
    %c0_i32_0 = arith.constant 0 : i32
    return %arg0, %c0_i32 : i32, i32
  }
  func.func @transform_3(%arg0: i32) -> (i32, i32) {
    %c0_i32 = arith.constant 0 : i32
    %c0_i32_0 = arith.constant 0 : i32
    return %arg0, %c0_i32 : i32, i32
  }
  func.func @transform_4(%arg0: i32) -> (i32, i32) {
    %c0_i32 = arith.constant 0 : i32
    %c0_i32_0 = arith.constant 0 : i32
    %c0_i32_1 = arith.constant 0 : i32
    return %c0_i32, %c0_i32_0 : i32, i32
  }
  func.func @transform_5(%arg0: i32) -> (i32, i32) {
    %c0_i32 = arith.constant 0 : i32
    %c0_i32_0 = arith.constant 0 : i32
    %c0_i32_1 = arith.constant 0 : i32
    return %c0_i32, %c0_i32_0 : i32, i32
  }
  func.func @transform_6(%arg0: i32) -> (i32, i32) {
    %c0_i32 = arith.constant 0 : i32
    %c0_i32_0 = arith.constant 0 : i32
    %c0_i32_1 = arith.constant 0 : i32
    return %c0_i32, %c0_i32_0 : i32, i32
  }
  func.func @transform_7(%arg0: i32) -> (i32, i32) {
    %c0_i32 = arith.constant 0 : i32
    %c0_i32_0 = arith.constant 0 : i32
    %c0_i32_1 = arith.constant 0 : i32
    return %c0_i32, %c0_i32_0 : i32, i32
  }
  func.func @transform_8(%arg0: i32) -> (i32, i32) {
    %c0_i32 = arith.constant 0 : i32
    %c0_i32_0 = arith.constant 0 : i32
    %c0_i32_1 = arith.constant 0 : i32
    return %c0_i32, %c0_i32_0 : i32, i32
  }
  func.func @transform_9(%arg0: i32) -> (i32, i32) {
    %c0_i32 = arith.constant 0 : i32
    %c0_i32_0 = arith.constant 0 : i32
    return %arg0, %c0_i32 : i32, i32
  }
}

module attributes {stable_mosaic.version = 11 : i64} {
  func.func @_fused_head_kernel(%arg0: i32, %arg1: memref<2x32xf32, #tpu.memory_space<vmem>>, %arg2: memref<2x32xf32, #tpu.memory_space<vmem>>, %arg3: memref<2x32xf32, #tpu.memory_space<vmem>>, %arg4: memref<2x32xf32, #tpu.memory_space<vmem>>, %arg5: memref<32x128xf32, #tpu.memory_space<vmem>>, %arg6: memref<32x128xf32, #tpu.memory_space<vmem>>, %arg7: memref<32x128xf32, #tpu.memory_space<vmem>>, %arg8: memref<32x128xf32, #tpu.memory_space<vmem>>, %arg9: memref<1x128xf32, #tpu.memory_space<vmem>>, %arg10: memref<2x128xf32, #tpu.memory_space<vmem>>) attributes {dimension_semantics = [#tpu.dimension_semantics<parallel>], iteration_bounds = array<i64: 1>, scalar_prefetch = 0 : i64, scratch_operands = 0 : i64, tpu.core_type = #tpu.core_type<tc>, window_params = [{transform_indices = @transform_0, window_bounds = array<i64: 2, 32>}, {transform_indices = @transform_1, window_bounds = array<i64: 2, 32>}, {transform_indices = @transform_2, window_bounds = array<i64: 2, 32>}, {transform_indices = @transform_3, window_bounds = array<i64: 2, 32>}, {pipeline_mode = #tpu.pipeline_mode<synchronous>, transform_indices = @transform_4, window_bounds = array<i64: 32, 128>}, {pipeline_mode = #tpu.pipeline_mode<synchronous>, transform_indices = @transform_5, window_bounds = array<i64: 32, 128>}, {pipeline_mode = #tpu.pipeline_mode<synchronous>, transform_indices = @transform_6, window_bounds = array<i64: 32, 128>}, {pipeline_mode = #tpu.pipeline_mode<synchronous>, transform_indices = @transform_7, window_bounds = array<i64: 32, 128>}, {pipeline_mode = #tpu.pipeline_mode<synchronous>, transform_indices = @transform_8, window_bounds = array<i64: 1, 128>}, {transform_indices = @transform_9, window_bounds = array<i64: 2, 128>}]} {
    %c0 = arith.constant 0 : index
    %c0_0 = arith.constant 0 : index
    %0 = vector.load %arg1[%c0, %c0_0] : memref<2x32xf32, #tpu.memory_space<vmem>>, vector<2x32xf32>
    %c0_1 = arith.constant 0 : index
    %c0_2 = arith.constant 0 : index
    %1 = vector.load %arg5[%c0_1, %c0_2] : memref<32x128xf32, #tpu.memory_space<vmem>>, vector<32x128xf32>
    %cst = arith.constant dense<0.000000e+00> : vector<2x128xf32>
    %2 = tpu.matmul %0, %1, %cst {dimension_numbers = #tpu.dot_dimension_numbers<[1], [0], [0], [1], [0, 0, 1, 1], [], []>} : vector<2x32xf32>, vector<32x128xf32>, vector<2x128xf32> -> vector<2x128xf32>
    %c0_3 = arith.constant 0 : index
    %c0_4 = arith.constant 0 : index
    %3 = vector.load %arg2[%c0_3, %c0_4] : memref<2x32xf32, #tpu.memory_space<vmem>>, vector<2x32xf32>
    %c0_5 = arith.constant 0 : index
    %c0_6 = arith.constant 0 : index
    %4 = vector.load %arg6[%c0_5, %c0_6] : memref<32x128xf32, #tpu.memory_space<vmem>>, vector<32x128xf32>
    %cst_7 = arith.constant dense<0.000000e+00> : vector<2x128xf32>
    %5 = tpu.matmul %3, %4, %cst_7 {dimension_numbers = #tpu.dot_dimension_numbers<[1], [0], [0], [1], [0, 0, 1, 1], [], []>} : vector<2x32xf32>, vector<32x128xf32>, vector<2x128xf32> -> vector<2x128xf32>
    %6 = arith.addf %2, %5 : vector<2x128xf32>
    %c0_8 = arith.constant 0 : index
    %c0_9 = arith.constant 0 : index
    %7 = vector.load %arg3[%c0_8, %c0_9] : memref<2x32xf32, #tpu.memory_space<vmem>>, vector<2x32xf32>
    %c0_10 = arith.constant 0 : index
    %c0_11 = arith.constant 0 : index
    %8 = vector.load %arg7[%c0_10, %c0_11] : memref<32x128xf32, #tpu.memory_space<vmem>>, vector<32x128xf32>
    %cst_12 = arith.constant dense<0.000000e+00> : vector<2x128xf32>
    %9 = tpu.matmul %7, %8, %cst_12 {dimension_numbers = #tpu.dot_dimension_numbers<[1], [0], [0], [1], [0, 0, 1, 1], [], []>} : vector<2x32xf32>, vector<32x128xf32>, vector<2x128xf32> -> vector<2x128xf32>
    %10 = arith.addf %6, %9 : vector<2x128xf32>
    %c0_13 = arith.constant 0 : index
    %c0_14 = arith.constant 0 : index
    %11 = vector.load %arg4[%c0_13, %c0_14] : memref<2x32xf32, #tpu.memory_space<vmem>>, vector<2x32xf32>
    %c0_15 = arith.constant 0 : index
    %c0_16 = arith.constant 0 : index
    %12 = vector.load %arg8[%c0_15, %c0_16] : memref<32x128xf32, #tpu.memory_space<vmem>>, vector<32x128xf32>
    %cst_17 = arith.constant dense<0.000000e+00> : vector<2x128xf32>
    %13 = tpu.matmul %11, %12, %cst_17 {dimension_numbers = #tpu.dot_dimension_numbers<[1], [0], [0], [1], [0, 0, 1, 1], [], []>} : vector<2x32xf32>, vector<32x128xf32>, vector<2x128xf32> -> vector<2x128xf32>
    %14 = arith.addf %10, %13 : vector<2x128xf32>
    %c0_18 = arith.constant 0 : index
    %c0_19 = arith.constant 0 : index
    %15 = vector.load %arg9[%c0_18, %c0_19] : memref<1x128xf32, #tpu.memory_space<vmem>>, vector<1x128xf32>
    %16 = vector.broadcast %15 : vector<1x128xf32> to vector<2x128xf32>
    %17 = arith.addf %14, %16 : vector<2x128xf32>
    %c0_20 = arith.constant 0 : index
    %c0_21 = arith.constant 0 : index
    %18 = vector.load %arg10[%c0_20, %c0_21] : memref<2x128xf32, #tpu.memory_space<vmem>>, vector<2x128xf32>
    tpu.vector_store %arg10[%c0_20, %c0_21], %17 {strides = array<i32>} : memref<2x128xf32, #tpu.memory_space<vmem>>, vector<2x128xf32>,
    return
  }
  func.func @transform_0(%arg0: i32) -> (i32, i32) {
    %c0_i32 = arith.constant 0 : i32
    %c0_i32_0 = arith.constant 0 : i32
    return %arg0, %c0_i32 : i32, i32
  }
  func.func @transform_1(%arg0: i32) -> (i32, i32) {
    %c0_i32 = arith.constant 0 : i32
    %c0_i32_0 = arith.constant 0 : i32
    return %arg0, %c0_i32 : i32, i32
  }
  func.func @transform_2(%arg0: i32) -> (i32, i32) {
    %c0_i32 = arith.constant 0 : i32
    %c0_i32_0 = arith.constant 0 : i32
    return %arg0, %c0_i32 : i32, i32
  }
  func.func @transform_3(%arg0: i32) -> (i32, i32) {
    %c0_i32 = arith.constant 0 : i32
    %c0_i32_0 = arith.constant 0 : i32
    return %arg0, %c0_i32 : i32, i32
  }
  func.func @transform_4(%arg0: i32) -> (i32, i32) {
    %c0_i32 = arith.constant 0 : i32
    %c0_i32_0 = arith.constant 0 : i32
    %c0_i32_1 = arith.constant 0 : i32
    return %c0_i32, %c0_i32_0 : i32, i32
  }
  func.func @transform_5(%arg0: i32) -> (i32, i32) {
    %c0_i32 = arith.constant 0 : i32
    %c0_i32_0 = arith.constant 0 : i32
    %c0_i32_1 = arith.constant 0 : i32
    return %c0_i32, %c0_i32_0 : i32, i32
  }
  func.func @transform_6(%arg0: i32) -> (i32, i32) {
    %c0_i32 = arith.constant 0 : i32
    %c0_i32_0 = arith.constant 0 : i32
    %c0_i32_1 = arith.constant 0 : i32
    return %c0_i32, %c0_i32_0 : i32, i32
  }
  func.func @transform_7(%arg0: i32) -> (i32, i32) {
    %c0_i32 = arith.constant 0 : i32
    %c0_i32_0 = arith.constant 0 : i32
    %c0_i32_1 = arith.constant 0 : i32
    return %c0_i32, %c0_i32_0 : i32, i32
  }
  func.func @transform_8(%arg0: i32) -> (i32, i32) {
    %c0_i32 = arith.constant 0 : i32
    %c0_i32_0 = arith.constant 0 : i32
    %c0_i32_1 = arith.constant 0 : i32
    return %c0_i32, %c0_i32_0 : i32, i32
  }
  func.func @transform_9(%arg0: i32) -> (i32, i32) {
    %c0_i32 = arith.constant 0 : i32
    %c0_i32_0 = arith.constant 0 : i32
    return %arg0, %c0_i32 : i32, i32
  }
}

</mosaic_0001>

<bundles_post_ra>
// kernel: tpu_custom_call.1
= control target key start
LH: loop header
LB: loop body
LE: loop exit
PB: predicated region body
PF: predicated region fallthrough
CT: control target
= control target key end

     0   :  { %14 = vsyncpa [#allocation3], 0  ;;  %s600_s0 = inlined_call_operand.hbm [shape: f32[2,32], index: 0, kind: input, shape index: {}]   ;;  %s601_s1 = inlined_call_operand.hbm [shape: f32[2,32], index: 1, kind: input, shape index: {}]   ;;  %s602_s2 = inlined_call_operand.hbm [shape: f32[2,32], index: 2, kind: input, shape index: {}]   ;;  %s603_s3 = inlined_call_operand.vmem [shape: f32[2,32], index: 3, kind: input, shape index: {}]   ;;  %s604_s4 = inlined_call_operand.hbm [shape: f32[32,128], index: 4, kind: input, shape index: {}]   ;;  %s605_s5 = inlined_call_operand.hbm [shape: f32[32,128], index: 5, kind: input, shape index: {}]   ;;  %s606_s6 = inlined_call_operand.hbm [shape: f32[32,128], index: 6, kind: input, shape index: {}]   ;;  %s607_s7 = inlined_call_operand.hbm [shape: f32[32,128], index: 7, kind: input, shape index: {}]   ;;  %s608_s8 = inlined_call_operand.vmem [shape: f32[1,128], index: 8, kind: input, shape index: {}]   ;;  %s609_s9 = inlined_call_operand.hbm [shape: f32[2,128], index: 9, kind: output, shape index: {}]  }
   0x1   :  { %15 = vsyncpa [#allocation6], 0 }
   0x2   :  { %16 = vsyncpa [#allocation9], 0 }
   0x3   :  { %17 = vsyncpa [#allocation12], 0  ;;  %s35_s11 = sshll.u32 %s601_s1, 4  ;;  %s36_s11 = int_to_ptr.hbm [resolvable:$true] %s35_s11 }
   0x4   :  { %18 = vsyncpa [#allocation4], 0  ;;  %s494_s12 = smov [#allocation5]   ;;  %s58_s16 = sshll.u32 %s604_s4, 4  ;;  %s59_s16 = int_to_ptr.hbm [resolvable:$true] %s58_s16 }
   0x5   :  { %s37_s13 = sshll.u32 %s494_s12, 4  ;;  %s495_s17 = smov [#allocation8]   ;;  %s38_s13 = int_to_ptr.vmem [resolvable:$true] %s37_s13 }
   0x6   :  { %40 = dma.hbm_to_vmem [thread:$0]  %s36_s11, 32, %s38_s13, [#allocation6]  }
   0x7   :  { %s60_s18 = sshll.u32 %s495_s17, 4  ;;  %s496_s19 = smov 128   ;;  %s61_s18 = int_to_ptr.vmem [resolvable:$true] %s60_s18 }
   0x8   :  { %s497_s20 = smov 8   ;;  %s84_s22 = sshll.u32 %s606_s6, 4  ;;  %s85_s22 = int_to_ptr.hbm [resolvable:$true] %s84_s22 }
   0x9   :  { %66 = dma.hbm_to_vmem [thread:$0]  %s59_s16, 512, %s61_s18, [#allocation9], %s496_s19, %s496_s19, %s497_s20  }
   0xa   :  { %s498_s23 = smov [#allocation11]   ;;  %s24_s26 = sshll.u32 %s600_s0, 4  ;;  %s25_s26 = int_to_ptr.hbm [resolvable:$true] %s24_s26 }
   0xb   :  { %s86_s24 = sshll.u32 %s498_s23, 4  ;;  %s499_s27 = smov [#allocation2]   ;;  %s87_s24 = int_to_ptr.vmem [resolvable:$true] %s86_s24 }
   0xc   :  { %92 = dma.hbm_to_vmem [thread:$0]  %s85_s22, 512, %s87_s24, [#allocation12], %s496_s19, %s496_s19, %s497_s20  }
   0xd   :  { %s26_s28 = sshll.u32 %s499_s27, 4  ;;  %s46_s10 = sshll.u32 %s602_s2, 4  ;;  %s27_s28 = int_to_ptr.vmem [resolvable:$true] %s26_s28  ;;  %s47_s10 = int_to_ptr.hbm [resolvable:$true] %s46_s10 }
   0xe   :  { %29 = dma.hbm_to_vmem [thread:$0]  %s25_s26, 32, %s27_s28, [#allocation3]  }
   0xf   :  { %s71_s12 = sshll.u32 %s605_s5, 4  ;;  %s500_s13 = smov [#allocation7]   ;;  %s72_s12 = int_to_ptr.hbm [resolvable:$true] %s71_s12 }
  0x10   :  { %s48_s0 = sshll.u32 %s500_s13, 4  ;;  %s501_s14 = smov [#allocation10]   ;;  %s49_s0 = int_to_ptr.vmem [resolvable:$true] %s48_s0 }
  0x11   :  { %51 = dma.hbm_to_vmem [thread:$0]  %s47_s10, 32, %s49_s0, [#allocation6]  }
  0x12   :  { %s73_s15 = sshll.u32 %s501_s14, 4  ;;  %s97_s18 = sshll.u32 %s607_s7, 4  ;;  %s74_s15 = int_to_ptr.vmem [resolvable:$true] %s73_s15  ;;  %s98_s18 = int_to_ptr.hbm [resolvable:$true] %s97_s18 }
  0x13   :  { %79 = dma.hbm_to_vmem [thread:$0]  %s72_s12, 512, %s74_s15, [#allocation9], %s496_s19, %s496_s19, %s497_s20  }
  0x14   :  { %s502_s2 = smov [#allocation13]  }
  0x15   :  { %s99_s1 = sshll.u32 %s502_s2, 4  ;;  %s100_s1 = int_to_ptr.vmem [resolvable:$true] %s99_s1 }
  0x16   :  { %105 = dma.hbm_to_vmem [thread:$0]  %s98_s18, 512, %s100_s1, [#allocation12], %s496_s19, %s496_s19, %s497_s20  }
  0x17   :  { %484 = dma.done.wait [#allocation3], 32  }
  0x18   :  { %485 = vsyncadd [#allocation3], 4294967264 }
  0x19   :  { %486 = dma.done.wait [#allocation6], 64  }
  0x1a   :  { %487 = vsyncadd [#allocation6], 4294967232 }
  0x1b   :  { %488 = dma.done.wait [#allocation9], 1024  }
  0x1c   :  { %489 = vsyncadd [#allocation9], 4294966272 }
  0x1d   :  { %490 = dma.done.wait [#allocation12], 1024  }
  0x1e   :  { %491 = vsyncadd [#allocation12], 4294966272  ;;  %v197_v0 = vld [vmem:[#allocation11 + $0x18] sm:$0xff]  ;;  %v196_v1 = vld [vmem:[#allocation11 + $0x10] sm:$0xff]  ;;  %vm146_vm0 = vcmask 261120   ;;  %s503_s20 = smov [#allocation14]  }
  0x1f   :  { %v226_v2 = vld [vmem:[#allocation13 + $0x18] sm:$0xff]  ;;  %213 = vmatpush.msra.mxu2 %v197_v0  ;;  %v195_v5 = vld [vmem:[#allocation11 + $0x8] sm:$0xff]  ;;  %v225_v6 = vld [vmem:[#allocation13 + $0x10] sm:$0xff]  ;;  %s262_s21 = sshll.u32 %s503_s20, 4  ;;  %s264_s24 = sshll.u32 %s609_s9, 4  ;;  %s263_s21 = int_to_ptr.vmem [resolvable:$true] %s262_s21  ;;  %s265_s24 = int_to_ptr.hbm [resolvable:$true] %s264_s24 }
  0x20   :  { %242 = vmatpush.msra.mxu3 %v226_v2  ;;  %v145_v3 = vld [vmem:[#allocation10 + $0x18] sm:$0xff]  ;;  %v144_v7 = vld [vmem:[#allocation10 + $0x10] sm:$0xff]  ;;  %v194_v9 = vld [vmem:[#allocation11] sm:$0xff] }
  0x21   :  { %v140_v4 = vld [vmem:[#allocation8 + $0x18] sm:$0xff]  ;;  %162 = vmatpush.msra.mxu0 %v145_v3  ;;  %v139_v8 = vld [vmem:[#allocation8 + $0x10] sm:$0xff]  ;;  %214 = vmatpush.msra.mxu2 %v196_v1  ;;  %v224_v10 = vld [vmem:[#allocation13 + $0x8] sm:$0xff] }
  0x22   :  { %185 = vmatpush.msra.mxu1 %v140_v4  ;;  %243 = vmatpush.msra.mxu3 %v225_v6  ;;  %v143_v11 = vld [vmem:[#allocation10 + $0x8] sm:$0xff]  ;;  %v223_v13 = vld [vmem:[#allocation13] sm:$0xff]  ;;  %v193_v14 = vld [vmem:[#allocation7] sm:$0x3] }
  0x23   :  { %163 = vmatpush.msra.mxu0 %v144_v7  ;;  %v138_v12 = vld [vmem:[#allocation8 + $0x8] sm:$0xff]  ;;  %215 = vmatpush.msra.mxu2 %v195_v5  ;;  %v222_v15 = vld [vmem:[%s603_s3] sm:$0x3]  ;;  %v142_v16 = vld [vmem:[#allocation10] sm:$0xff] }
  0x24   :  { %186 = vmatpush.msra.mxu1 %v139_v8  ;;  %244 = vmatpush.msra.mxu3 %v224_v10  ;;  %v137_v17 = vld [vmem:[#allocation8] sm:$0xff]  ;;  %v141_v18 = vld [vmem:[#allocation5] sm:$0x3]  ;;  %v136_v19 = vld [vmem:[#allocation2] sm:$0x3] }
  0x25   :  { %164 = vmatpush.msra.mxu0 %v143_v11  ;;  %216 = vmatpush.msra.mxu2 %v194_v9  ;;  %v291_v26 = vld [vmem:[%s608_s8] ss:$0 sm:$0xff] }
  0x26   :  { %187 = vmatpush.msra.mxu1 %v138_v12  ;;  %245 = vmatpush.msra.mxu3 %v223_v13 }
  0x27   :  { %279 = vmatmul.msk.f32.vlgmr.msra.gmra.mxu2 %vm146_vm0, %v193_v14  ;;  %280 = vmatmul.msk.f32.vlgmr.msra.gmra.mxu3 %vm146_vm0, %v222_v15 }
  0x28   :  { %165 = vmatpush.msra.mxu0 %v142_v16  ;;  %188 = vmatpush.msra.mxu1 %v137_v17 }
  0x29   :  { %277 = vmatmul.msk.f32.vlgmr.msra.gmra.mxu0 %vm146_vm0, %v141_v18  ;;  %278 = vmatmul.msk.f32.vlgmr.msra.gmra.mxu1 %vm146_vm0, %v136_v19 }
  0xa6   :  { %v167_v20 = vpop.f32.mrf.mxu0  ;;  %v190_v21 = vpop.f32.mrf.mxu1 }
  0xa7   :  { %v191_v22 = vadd.f32 %v190_v21, %v167_v20 }
  0xaa   :  { %v218_v23 = vpop.f32.mrf.mxu2  ;;  %v247_v24 = vpop.f32.mrf.mxu3 }
  0xab   :  { %v221_v25 = vadd.f32 %v218_v23, %v191_v22 }
  0xad   :  { %v250_v27 = vadd.f32 %v247_v24, %v221_v25 }
  0xaf   :  { %v255_v28 = vadd.f32 %v291_v26, %v250_v27 }
  0xb1   :  { %256 = vst [vmem:[#allocation14] sm:$0x3] %v255_v28 }
  0xb2   :  { %267 = dma.vmem_to_hbm [thread:$0]  %s263_s21, 32, %s265_s24, [#allocation4]  }
  0xb3   :  { %492 = dma.done.wait [#allocation4], 32  }
  0xb4   :  { %493 = vsyncadd [#allocation4], 4294967264 }
  0xb5   :  { %272 = vsyncpa [#allocation3], 1 }
  0xb6   :  { %273 = vsyncpa [#allocation6], 1 }
  0xb7   :  { %274 = vsyncpa [#allocation9], 1 }
  0xb8   :  { %275 = vsyncpa [#allocation12], 1 }
  0xb9   :  { %276 = vsyncpa [#allocation4], 1 }

// kernel: tpu_custom_call.1
= control target key start
LH: loop header
LB: loop body
LE: loop exit
PB: predicated region body
PF: predicated region fallthrough
CT: control target
= control target key end

     0   :  { %14 = vsyncpa [#allocation3], 0  ;;  %s600_s0 = inlined_call_operand.hbm [shape: f32[2,32], index: 0, kind: input, shape index: {}]   ;;  %s601_s1 = inlined_call_operand.hbm [shape: f32[2,32], index: 1, kind: input, shape index: {}]   ;;  %s602_s2 = inlined_call_operand.hbm [shape: f32[2,32], index: 2, kind: input, shape index: {}]   ;;  %s603_s3 = inlined_call_operand.vmem [shape: f32[2,32], index: 3, kind: input, shape index: {}]   ;;  %s604_s4 = inlined_call_operand.hbm [shape: f32[32,128], index: 4, kind: input, shape index: {}]   ;;  %s605_s5 = inlined_call_operand.hbm [shape: f32[32,128], index: 5, kind: input, shape index: {}]   ;;  %s606_s6 = inlined_call_operand.hbm [shape: f32[32,128], index: 6, kind: input, shape index: {}]   ;;  %s607_s7 = inlined_call_operand.hbm [shape: f32[32,128], index: 7, kind: input, shape index: {}]   ;;  %s608_s8 = inlined_call_operand.vmem [shape: f32[1,128], index: 8, kind: input, shape index: {}]   ;;  %s609_s9 = inlined_call_operand.hbm [shape: f32[2,128], index: 9, kind: output, shape index: {}]  }
   0x1   :  { %15 = vsyncpa [#allocation6], 0 }
   0x2   :  { %16 = vsyncpa [#allocation9], 0 }
   0x3   :  { %17 = vsyncpa [#allocation12], 0  ;;  %s35_s11 = sshll.u32 %s601_s1, 4  ;;  %s36_s11 = int_to_ptr.hbm [resolvable:$true] %s35_s11 }
   0x4   :  { %18 = vsyncpa [#allocation4], 0  ;;  %s494_s12 = smov [#allocation5]   ;;  %s58_s16 = sshll.u32 %s604_s4, 4  ;;  %s59_s16 = int_to_ptr.hbm [resolvable:$true] %s58_s16 }
   0x5   :  { %s37_s13 = sshll.u32 %s494_s12, 4  ;;  %s495_s17 = smov [#allocation8]   ;;  %s38_s13 = int_to_ptr.vmem [resolvable:$true] %s37_s13 }
   0x6   :  { %40 = dma.hbm_to_vmem [thread:$0]  %s36_s11, 32, %s38_s13, [#allocation6]  }
   0x7   :  { %s60_s18 = sshll.u32 %s495_s17, 4  ;;  %s496_s19 = smov 128   ;;  %s61_s18 = int_to_ptr.vmem [resolvable:$true] %s60_s18 }
   0x8   :  { %s497_s20 = smov 8   ;;  %s84_s22 = sshll.u32 %s606_s6, 4  ;;  %s85_s22 = int_to_ptr.hbm [resolvable:$true] %s84_s22 }
   0x9   :  { %66 = dma.hbm_to_vmem [thread:$0]  %s59_s16, 512, %s61_s18, [#allocation9], %s496_s19, %s496_s19, %s497_s20  }
   0xa   :  { %s498_s23 = smov [#allocation11]   ;;  %s24_s26 = sshll.u32 %s600_s0, 4  ;;  %s25_s26 = int_to_ptr.hbm [resolvable:$true] %s24_s26 }
   0xb   :  { %s86_s24 = sshll.u32 %s498_s23, 4  ;;  %s499_s27 = smov [#allocation2]   ;;  %s87_s24 = int_to_ptr.vmem [resolvable:$true] %s86_s24 }
   0xc   :  { %92 = dma.hbm_to_vmem [thread:$0]  %s85_s22, 512, %s87_s24, [#allocation12], %s496_s19, %s496_s19, %s497_s20  }
   0xd   :  { %s26_s28 = sshll.u32 %s499_s27, 4  ;;  %s46_s10 = sshll.u32 %s602_s2, 4  ;;  %s27_s28 = int_to_ptr.vmem [resolvable:$true] %s26_s28  ;;  %s47_s10 = int_to_ptr.hbm [resolvable:$true] %s46_s10 }
   0xe   :  { %29 = dma.hbm_to_vmem [thread:$0]  %s25_s26, 32, %s27_s28, [#allocation3]  }
   0xf   :  { %s71_s12 = sshll.u32 %s605_s5, 4  ;;  %s500_s13 = smov [#allocation7]   ;;  %s72_s12 = int_to_ptr.hbm [resolvable:$true] %s71_s12 }
  0x10   :  { %s48_s0 = sshll.u32 %s500_s13, 4  ;;  %s501_s14 = smov [#allocation10]   ;;  %s49_s0 = int_to_ptr.vmem [resolvable:$true] %s48_s0 }
  0x11   :  { %51 = dma.hbm_to_vmem [thread:$0]  %s47_s10, 32, %s49_s0, [#allocation6]  }
  0x12   :  { %s73_s15 = sshll.u32 %s501_s14, 4  ;;  %s97_s18 = sshll.u32 %s607_s7, 4  ;;  %s74_s15 = int_to_ptr.vmem [resolvable:$true] %s73_s15  ;;  %s98_s18 = int_to_ptr.hbm [resolvable:$true] %s97_s18 }
  0x13   :  { %79 = dma.hbm_to_vmem [thread:$0]  %s72_s12, 512, %s74_s15, [#allocation9], %s496_s19, %s496_s19, %s497_s20  }
  0x14   :  { %s502_s2 = smov [#allocation13]  }
  0x15   :  { %s99_s1 = sshll.u32 %s502_s2, 4  ;;  %s100_s1 = int_to_ptr.vmem [resolvable:$true] %s99_s1 }
  0x16   :  { %105 = dma.hbm_to_vmem [thread:$0]  %s98_s18, 512, %s100_s1, [#allocation12], %s496_s19, %s496_s19, %s497_s20  }
  0x17   :  { %484 = dma.done.wait [#allocation3], 32  }
  0x18   :  { %485 = vsyncadd [#allocation3], 4294967264 }
  0x19   :  { %486 = dma.done.wait [#allocation6], 64  }
  0x1a   :  { %487 = vsyncadd [#allocation6], 4294967232 }
  0x1b   :  { %488 = dma.done.wait [#allocation9], 1024  }
  0x1c   :  { %489 = vsyncadd [#allocation9], 4294966272 }
  0x1d   :  { %490 = dma.done.wait [#allocation12], 1024  }
  0x1e   :  { %491 = vsyncadd [#allocation12], 4294966272  ;;  %v197_v0 = vld [vmem:[#allocation11 + $0x18] sm:$0xff]  ;;  %v196_v1 = vld [vmem:[#allocation11 + $0x10] sm:$0xff]  ;;  %vm146_vm0 = vcmask 261120   ;;  %s503_s20 = smov [#allocation14]  }
  0x1f   :  { %v226_v2 = vld [vmem:[#allocation13 + $0x18] sm:$0xff]  ;;  %213 = vmatpush.msra.mxu2 %v197_v0  ;;  %v195_v5 = vld [vmem:[#allocation11 + $0x8] sm:$0xff]  ;;  %v225_v6 = vld [vmem:[#allocation13 + $0x10] sm:$0xff]  ;;  %s262_s21 = sshll.u32 %s503_s20, 4  ;;  %s264_s24 = sshll.u32 %s609_s9, 4  ;;  %s263_s21 = int_to_ptr.vmem [resolvable:$true] %s262_s21  ;;  %s265_s24 = int_to_ptr.hbm [resolvable:$true] %s264_s24 }
  0x20   :  { %242 = vmatpush.msra.mxu3 %v226_v2  ;;  %v145_v3 = vld [vmem:[#allocation10 + $0x18] sm:$0xff]  ;;  %v144_v7 = vld [vmem:[#allocation10 + $0x10] sm:$0xff]  ;;  %v194_v9 = vld [vmem:[#allocation11] sm:$0xff] }
  0x21   :  { %v140_v4 = vld [vmem:[#allocation8 + $0x18] sm:$0xff]  ;;  %162 = vmatpush.msra.mxu0 %v145_v3  ;;  %v139_v8 = vld [vmem:[#allocation8 + $0x10] sm:$0xff]  ;;  %214 = vmatpush.msra.mxu2 %v196_v1  ;;  %v224_v10 = vld [vmem:[#allocation13 + $0x8] sm:$0xff] }
  0x22   :  { %185 = vmatpush.msra.mxu1 %v140_v4  ;;  %243 = vmatpush.msra.mxu3 %v225_v6  ;;  %v143_v11 = vld [vmem:[#allocation10 + $0x8] sm:$0xff]  ;;  %v223_v13 = vld [vmem:[#allocation13] sm:$0xff]  ;;  %v193_v14 = vld [vmem:[#allocation7] sm:$0x3] }
  0x23   :  { %163 = vmatpush.msra.mxu0 %v144_v7  ;;  %v138_v12 = vld [vmem:[#allocation8 + $0x8] sm:$0xff]  ;;  %215 = vmatpush.msra.mxu2 %v195_v5  ;;  %v222_v15 = vld [vmem:[%s603_s3] sm:$0x3]  ;;  %v142_v16 = vld [vmem:[#allocation10] sm:$0xff] }
  0x24   :  { %186 = vmatpush.msra.mxu1 %v139_v8  ;;  %244 = vmatpush.msra.mxu3 %v224_v10  ;;  %v137_v17 = vld [vmem:[#allocation8] sm:$0xff]  ;;  %v141_v18 = vld [vmem:[#allocation5] sm:$0x3]  ;;  %v136_v19 = vld [vmem:[#allocation2] sm:$0x3] }
  0x25   :  { %164 = vmatpush.msra.mxu0 %v143_v11  ;;  %216 = vmatpush.msra.mxu2 %v194_v9  ;;  %v291_v26 = vld [vmem:[%s608_s8] ss:$0 sm:$0xff] }
  0x26   :  { %187 = vmatpush.msra.mxu1 %v138_v12  ;;  %245 = vmatpush.msra.mxu3 %v223_v13 }
  0x27   :  { %279 = vmatmul.msk.f32.vlgmr.msra.gmra.mxu2 %vm146_vm0, %v193_v14  ;;  %280 = vmatmul.msk.f32.vlgmr.msra.gmra.mxu3 %vm146_vm0, %v222_v15 }
  0x28   :  { %165 = vmatpush.msra.mxu0 %v142_v16  ;;  %188 = vmatpush.msra.mxu1 %v137_v17 }
  0x29   :  { %277 = vmatmul.msk.f32.vlgmr.msra.gmra.mxu0 %vm146_vm0, %v141_v18  ;;  %278 = vmatmul.msk.f32.vlgmr.msra.gmra.mxu1 %vm146_vm0, %v136_v19 }
  0xa6   :  { %v167_v20 = vpop.f32.mrf.mxu0  ;;  %v190_v21 = vpop.f32.mrf.mxu1 }
  0xa7   :  { %v191_v22 = vadd.f32 %v190_v21, %v167_v20 }
  0xaa   :  { %v218_v23 = vpop.f32.mrf.mxu2  ;;  %v247_v24 = vpop.f32.mrf.mxu3 }
  0xab   :  { %v221_v25 = vadd.f32 %v218_v23, %v191_v22 }
  0xad   :  { %v250_v27 = vadd.f32 %v247_v24, %v221_v25 }
  0xaf   :  { %v255_v28 = vadd.f32 %v291_v26, %v250_v27 }
  0xb1   :  { %256 = vst [vmem:[#allocation14] sm:$0x3] %v255_v28 }
  0xb2   :  { %267 = dma.vmem_to_hbm [thread:$0]  %s263_s21, 32, %s265_s24, [#allocation4]  }
  0xb3   :  { %492 = dma.done.wait [#allocation4], 32  }
  0xb4   :  { %493 = vsyncadd [#allocation4], 4294967264 }
  0xb5   :  { %272 = vsyncpa [#allocation3], 1 }
  0xb6   :  { %273 = vsyncpa [#allocation6], 1 }
  0xb7   :  { %274 = vsyncpa [#allocation9], 1 }
  0xb8   :  { %275 = vsyncpa [#allocation12], 1 }
  0xb9   :  { %276 = vsyncpa [#allocation4], 1 }

</bundles_post_ra>
